<compile_context>
chip_gen: v7x
topology: tpu7x:2x2x1
jax: 0.10.0
libtpu: 0.0.40
codegen_flags: <defaults>
</compile_context>

<pallas_src>
import jax
import jax.numpy as jnp
from jax.experimental import pallas as pl
from jax.experimental.pallas import tpu as pltpu


def _images_per_step(n):
    """Largest divisor of n that still leaves >= 2 grid steps (keeps both v7x TCs busy)."""
    if n <= 1:
        return max(n, 1)
    for nb in range(n // 2, 0, -1):
        if n % nb == 0:
            return nb
    return 1


def refinement_stage_block(x_nchw, params):
    """x_nchw: (N, Cin, H, W) float32 -> (N, Cout, H, W) float32."""
    w1, b1, w2, b2, w3, b3 = params
    N, Cin, H, W = x_nchw.shape
    Cout = w1.shape[1]
    HW = H * W

    nb = _images_per_step(N)          # images packed on the lane axis per grid step
    G = N // nb                       # grid steps (>= 2 whenever N >= 2)
    L = nb * HW                       # lanes per grid step
    assert N % nb == 0
    assert (L % 128 == 0) or (G == 1), "lane block must be 128-aligned when the lane axis is tiled"

    # ---- host-side packing (one-off XLA ops, outside the kernel) ----
    # activations -> (C, N*HW): channels on sublanes, all pixels on lanes.
    x_pack = jnp.transpose(
        x_nchw.reshape(N, Cin, HW).astype(jnp.float32), (1, 0, 2)
    ).reshape(Cin, N * HW)
    w1_k = jnp.transpose(w1).astype(jnp.float32)                                   # (Cout, Cin)
    # 3x3 weights as (Cout, 9*Cout); row = (ky*3+kx)*Cout + cin. bf16 -> native MXU rate.
    w2_k = jnp.transpose(w2, (3, 0, 1, 2)).reshape(Cout, 9 * Cout).astype(jnp.bfloat16)
    w3_k = jnp.transpose(w3, (3, 0, 1, 2)).reshape(Cout, 9 * Cout).astype(jnp.bfloat16)
    b1_k = b1.reshape(Cout, 1).astype(jnp.float32)
    b2_k = b2.reshape(Cout, 1).astype(jnp.float32)
    b3_k = b3.reshape(Cout, 1).astype(jnp.float32)

    def kernel(x_ref, w1_ref, b1_ref, w2_ref, b2_ref, w3_ref, b3_ref, out_ref, patch_ref):
        x = x_ref[...]                                               # (Cin, L)

        # --- initial: 1x1 conv (+bias) + ReLU == channel matmul on the MXU ---
        init = jnp.dot(w1_ref[...], x, preferred_element_type=jnp.float32)
        init = jnp.maximum(init + b1_ref[...], 0.0)                  # (Cout, L) lane-dense

        # Per-lane pixel indices. nb images are packed side-by-side on the lane
        # axis; masks use the PER-IMAGE local index so taps never cross a seam.
        p = jax.lax.broadcasted_iota(jnp.int32, (Cout, L), 1)
        p_loc = jnp.bitwise_and(p, HW - 1) if (HW & (HW - 1)) == 0 else jnp.remainder(p, HW)
        x_idx = jnp.bitwise_and(p, W - 1) if (W & (W - 1)) == 0 else jnp.remainder(p, W)

        def conv3x3(a, w_ref, b_ref, d):
            """3x3 conv, dilation=d, zero-padding=d, on a (Cout, L) activation."""
            assert d * W + d < HW, "shift trick requires the tap offset to stay inside one image"
            # Primitive border masks, built once per conv and AND-ed per tap.
            ok_l = x_idx >= d                 # dx = -d
            ok_r = x_idx < W - d              # dx = +d
            ok_u = p_loc >= d * W             # dy = -d
            ok_d = p_loc < HW - d * W         # dy = +d
            xm = {-1: ok_l, 0: None, 1: ok_r}
            ym = {-1: ok_u, 0: None, 1: ok_d}

            for ky in range(3):
                for kx in range(3):
                    dy = (ky - 1) * d
                    dx = (kx - 1) * d
                    s = (dy * W + dx) % L
                    # shifted[:, p] == a[:, (p + dy*W + dx) mod L]: circular shift on
                    # the XLU (no unaligned-slice VMEM copies, no doubled temporary).
                    shifted = a if s == 0 else pltpu.roll(a, shift=(L - s) % L, axis=1)
                    m = xm[kx - 1]
                    my = ym[ky - 1]
                    if m is None:
                        m = my
                    elif my is not None:
                        m = jnp.logical_and(m, my)
                    if m is not None:
                        shifted = jnp.where(m, shifted, 0.0)          # zero-pad the halo
                    idx = ky * 3 + kx
                    patch_ref[idx * Cout:(idx + 1) * Cout, :] = shifted

            # Single big-K im2col matmul: bf16 operands, f32 accumulate on the MXU.
            y = jnp.dot(w_ref[...], patch_ref[...].astype(jnp.bfloat16),
                        preferred_element_type=jnp.float32)
            return jnp.maximum(y + b_ref[...], 0.0)                   # (Cout, L)

        t = conv3x3(init, w2_ref, b2_ref, 1)     # 3x3, dil=1, pad=1 (BN folded)
        t = conv3x3(t, w3_ref, b3_ref, 2)        # 3x3, dil=2, pad=2 (BN folded)

        out_ref[...] = (init + t).astype(out_ref.dtype)               # lane-dense unmasked store

    out_pack = pl.pallas_call(
        kernel,
        out_shape=jax.ShapeDtypeStruct((Cout, N * HW), jnp.float32),
        grid_spec=pltpu.PrefetchScalarGridSpec(
            num_scalar_prefetch=0,
            grid=(G,),   # >= 2 parallel steps when N >= 2 -> megacore split on v7x
            in_specs=[
                pl.BlockSpec((Cin, L), lambda g: (0, g)),
                pl.BlockSpec((Cout, Cin), lambda g: (0, 0)),
                pl.BlockSpec((Cout, 1), lambda g: (0, 0)),
                pl.BlockSpec((Cout, 9 * Cout), lambda g: (0, 0)),
                pl.BlockSpec((Cout, 1), lambda g: (0, 0)),
                pl.BlockSpec((Cout, 9 * Cout), lambda g: (0, 0)),
                pl.BlockSpec((Cout, 1), lambda g: (0, 0)),
            ],
            out_specs=pl.BlockSpec((Cout, L), lambda g: (0, g)),
            scratch_shapes=[pltpu.VMEM((9 * Cout, L), jnp.float32)],   # im2col patch scratch
        ),
        compiler_params=pltpu.CompilerParams(dimension_semantics=("parallel",)),
    )(x_pack, w1_k, b1_k, w2_k, b2_k, w3_k, b3_k)

    return jnp.transpose(out_pack.reshape(Cout, N, HW), (1, 0, 2)).reshape(N, Cout, H, W)


def init_params(key, in_channels, out_channels):
    """Deterministic synthetic params; BN (eval mode) folded into conv w/b."""
    ks = jax.random.split(key, 6)
    # initial 1x1 conv (no BN). Weight stored as (Cin, Cout).
    w1 = jax.random.normal(ks[0], (in_channels, out_channels), jnp.float32) * 0.1
    b1 = jax.random.normal(ks[1], (out_channels,), jnp.float32) * 0.1
    # trunk convs stored HWIO: (3, 3, Cout, Cout)
    w2 = jax.random.normal(ks[2], (3, 3, out_channels, out_channels), jnp.float32) * 0.1
    b2 = jax.random.normal(ks[3], (out_channels,), jnp.float32) * 0.1
    w3 = jax.random.normal(ks[4], (3, 3, out_channels, out_channels), jnp.float32) * 0.1
    b3 = jax.random.normal(ks[5], (out_channels,), jnp.float32) * 0.1

    def fold_bn(w, b, idx):
        c = w.shape[-1]
        gamma = 1.0 + 0.1 * jnp.arange(c, dtype=jnp.float32)
        beta = 0.05 * jnp.arange(c, dtype=jnp.float32) - 0.1 * idx
        mean = 0.02 * jnp.arange(c, dtype=jnp.float32)
        var = 1.0 + 0.03 * jnp.arange(c, dtype=jnp.float32)
        scale = gamma / jnp.sqrt(var + 1e-5)
        return w * scale, (b - mean) * scale + beta

    w2, b2 = fold_bn(w2, b2, 1)
    w3, b3 = fold_bn(w3, b3, 2)
    return (w1, b1, w2, b2, w3, b3)


def ref_forward(x_nchw, params):
    """Pure-JAX reference (BN already folded into params)."""
    w1, b1, w2, b2, w3, b3 = params
    x = jnp.transpose(x_nchw, (0, 2, 3, 1))
    init = jax.nn.relu(jnp.einsum('nhwc,co->nhwo', x, w1) + b1)

    def conv3(inp, w, b, d):
        y = jax.lax.conv_general_dilated(
            inp, w, window_strides=(1, 1),
            padding=((d, d), (d, d)), rhs_dilation=(d, d),
            dimension_numbers=('NHWC', 'HWIO', 'NHWC'))
        return jax.nn.relu(y + b)

    t = conv3(init, w2, b2, 1)
    t = conv3(t, w3, b3, 2)
    return jnp.transpose(init + t, (0, 3, 1, 2))


if __name__ == "__main__":
    key = jax.random.PRNGKey(0)
    kx, kp = jax.random.split(key)
    # N=4 exercises both lane-batching (2 images per step) and a 2-step parallel grid.
    N, Cin, Cout, H, W = 4, 4, 8, 16, 16

    x = jax.random.normal(kx, (N, Cin, H, W), jnp.float32)
    params = init_params(kp, Cin, Cout)

    out = refinement_stage_block(x, params)
    out = jax.block_until_ready(out)

    ref = ref_forward(x, params)
    assert out.shape == (N, Cout, H, W), out.shape
    # Tolerance accounts for bf16 MXU feed of the two 3x3 convs (f32 accumulate);
    # structural bugs (wrong tap / mask / BN fold) produce errors ~1e-1 and still fail.
    assert jnp.allclose(out, ref, atol=2e-2, rtol=2e-2), float(jnp.max(jnp.abs(out - ref)))
    print("KERNEL_OK")
</pallas_src>

<mosaic_0001>
module attributes {stable_mosaic.version = 11 : i64} {
  func.func @kernel(%arg0: i32, %arg1: memref<4x512xf32, #tpu.memory_space<vmem>>, %arg2: memref<8x4xf32, #tpu.memory_space<vmem>>, %arg3: memref<8x1xf32, #tpu.memory_space<vmem>>, %arg4: memref<8x72xbf16, #tpu.memory_space<vmem>>, %arg5: memref<8x1xf32, #tpu.memory_space<vmem>>, %arg6: memref<8x72xbf16, #tpu.memory_space<vmem>>, %arg7: memref<8x1xf32, #tpu.memory_space<vmem>>, %arg8: memref<8x512xf32, #tpu.memory_space<vmem>>, %arg9: memref<72x512xf32, #tpu.memory_space<vmem>>) attributes {dimension_semantics = [#tpu.dimension_semantics<parallel>], iteration_bounds = array<i64: 2>, scalar_prefetch = 0 : i64, scratch_operands = 1 : i64, tpu.core_type = #tpu.core_type<tc>, window_params = [{transform_indices = @transform_0, window_bounds = array<i64: 4, 512>}, {pipeline_mode = #tpu.pipeline_mode<synchronous>, transform_indices = @transform_1, window_bounds = array<i64: 8, 4>}, {pipeline_mode = #tpu.pipeline_mode<synchronous>, transform_indices = @transform_2, window_bounds = array<i64: 8, 1>}, {pipeline_mode = #tpu.pipeline_mode<synchronous>, transform_indices = @transform_3, window_bounds = array<i64: 8, 72>}, {pipeline_mode = #tpu.pipeline_mode<synchronous>, transform_indices = @transform_4, window_bounds = array<i64: 8, 1>}, {pipeline_mode = #tpu.pipeline_mode<synchronous>, transform_indices = @transform_5, window_bounds = array<i64: 8, 72>}, {pipeline_mode = #tpu.pipeline_mode<synchronous>, transform_indices = @transform_6, window_bounds = array<i64: 8, 1>}, {transform_indices = @transform_7, window_bounds = array<i64: 8, 512>}]} {
    %c0 = arith.constant 0 : index
    %c0_0 = arith.constant 0 : index
    %0 = vector.load %arg1[%c0, %c0_0] : memref<4x512xf32, #tpu.memory_space<vmem>>, vector<4x512xf32>
    %c0_1 = arith.constant 0 : index
    %c0_2 = arith.constant 0 : index
    %1 = vector.load %arg2[%c0_1, %c0_2] : memref<8x4xf32, #tpu.memory_space<vmem>>, vector<8x4xf32>
    %cst = arith.constant dense<0.000000e+00> : vector<8x512xf32>
    %2 = tpu.matmul %1, %0, %cst {dimension_numbers = #tpu.dot_dimension_numbers<[1], [0], [0], [1], [0, 0, 1, 1], [], []>} : vector<8x4xf32>, vector<4x512xf32>, vector<8x512xf32> -> vector<8x512xf32>
    %c0_3 = arith.constant 0 : index
    %c0_4 = arith.constant 0 : index
    %3 = vector.load %arg3[%c0_3, %c0_4] : memref<8x1xf32, #tpu.memory_space<vmem>>, vector<8x1xf32>
    %4 = vector.broadcast %3 : vector<8x1xf32> to vector<8x512xf32>
    %5 = arith.addf %2, %4 : vector<8x512xf32>
    %cst_5 = arith.constant 0.000000e+00 : f32
    %6 = vector.broadcast %cst_5 : f32 to vector<8x512xf32>
    %7 = arith.maximumf %5, %6 : vector<8x512xf32>
    %8 = tpu.iota {dimensions = array<i32: 1>} : vector<8x512xi32>
    %c255_i32 = arith.constant 255 : i32
    %9 = vector.broadcast %c255_i32 : i32 to vector<8x512xi32>
    %10 = arith.andi %8, %9 : vector<8x512xi32>
    %c15_i32 = arith.constant 15 : i32
    %11 = vector.broadcast %c15_i32 : i32 to vector<8x512xi32>
    %12 = arith.andi %8, %11 : vector<8x512xi32>
    %c1_i32 = arith.constant 1 : i32
    %13 = vector.broadcast %c1_i32 : i32 to vector<8x512xi32>
    %14 = arith.cmpi sge, %12, %13 : vector<8x512xi32>
    %c15_i32_6 = arith.constant 15 : i32
    %15 = vector.broadcast %c15_i32_6 : i32 to vector<8x512xi32>
    %16 = arith.cmpi slt, %12, %15 : vector<8x512xi32>
    %c16_i32 = arith.constant 16 : i32
    %17 = vector.broadcast %c16_i32 : i32 to vector<8x512xi32>
    %18 = arith.cmpi sge, %10, %17 : vector<8x512xi32>
    %c240_i32 = arith.constant 240 : i32
    %19 = vector.broadcast %c240_i32 : i32 to vector<8x512xi32>
    %20 = arith.cmpi slt, %10, %19 : vector<8x512xi32>
    %c17_i32 = arith.constant 17 : i32
    %21 = tpu.dynamic_rotate %7 by %c17_i32 dim 1 : vector<8x512xf32>, i32 -> vector<8x512xf32>
    %22 = arith.andi %14, %18 : vector<8x512xi1>
    %cst_7 = arith.constant 0.000000e+00 : f32
    %23 = vector.broadcast %cst_7 : f32 to vector<8x512xf32>
    %24 = arith.select %22, %21, %23 : vector<8x512xi1>, vector<8x512xf32>
    %c0_8 = arith.constant 0 : index
    %c0_9 = arith.constant 0 : index
    %25 = vector.load %arg9[%c0_8, %c0_9] : memref<72x512xf32, #tpu.memory_space<vmem>>, vector<8x512xf32>
    tpu.vector_store %arg9[%c0_8, %c0_9], %24 {strides = array<i32>} : memref<72x512xf32, #tpu.memory_space<vmem>>, vector<8x512xf32>,
    %c16_i32_10 = arith.constant 16 : i32
    %26 = tpu.dynamic_rotate %7 by %c16_i32_10 dim 1 : vector<8x512xf32>, i32 -> vector<8x512xf32>
    %cst_11 = arith.constant 0.000000e+00 : f32
    %27 = vector.broadcast %cst_11 : f32 to vector<8x512xf32>
    %28 = arith.select %18, %26, %27 : vector<8x512xi1>, vector<8x512xf32>
    %c8 = arith.constant 8 : index
    %c0_12 = arith.constant 0 : index
    %29 = vector.load %arg9[%c8, %c0_12] : memref<72x512xf32, #tpu.memory_space<vmem>>, vector<8x512xf32>
    tpu.vector_store %arg9[%c8, %c0_12], %28 {strides = array<i32>} : memref<72x512xf32, #tpu.memory_space<vmem>>, vector<8x512xf32>,
    %c15_i32_13 = arith.constant 15 : i32
    %30 = tpu.dynamic_rotate %7 by %c15_i32_13 dim 1 : vector<8x512xf32>, i32 -> vector<8x512xf32>
    %31 = arith.andi %16, %18 : vector<8x512xi1>
    %cst_14 = arith.constant 0.000000e+00 : f32
    %32 = vector.broadcast %cst_14 : f32 to vector<8x512xf32>
    %33 = arith.select %31, %30, %32 : vector<8x512xi1>, vector<8x512xf32>
    %c16 = arith.constant 16 : index
    %c0_15 = arith.constant 0 : index
    %34 = vector.load %arg9[%c16, %c0_15] : memref<72x512xf32, #tpu.memory_space<vmem>>, vector<8x512xf32>
    tpu.vector_store %arg9[%c16, %c0_15], %33 {strides = array<i32>} : memref<72x512xf32, #tpu.memory_space<vmem>>, vector<8x512xf32>,
    %c1_i32_16 = arith.constant 1 : i32
    %35 = tpu.dynamic_rotate %7 by %c1_i32_16 dim 1 : vector<8x512xf32>, i32 -> vector<8x512xf32>
    %cst_17 = arith.constant 0.000000e+00 : f32
    %36 = vector.broadcast %cst_17 : f32 to vector<8x512xf32>
    %37 = arith.select %14, %35, %36 : vector<8x512xi1>, vector<8x512xf32>
    %c24 = arith.constant 24 : index
    %c0_18 = arith.constant 0 : index
    %38 = vector.load %arg9[%c24, %c0_18] : memref<72x512xf32, #tpu.memory_space<vmem>>, vector<8x512xf32>
    tpu.vector_store %arg9[%c24, %c0_18], %37 {strides = array<i32>} : memref<72x512xf32, #tpu.memory_space<vmem>>, vector<8x512xf32>,
    %c32 = arith.constant 32 : index
    %c0_19 = arith.constant 0 : index
    %39 = vector.load %arg9[%c32, %c0_19] : memref<72x512xf32, #tpu.memory_space<vmem>>, vector<8x512xf32>
    tpu.vector_store %arg9[%c32, %c0_19], %7 {strides = array<i32>} : memref<72x512xf32, #tpu.memory_space<vmem>>, vector<8x512xf32>,
    %c511_i32 = arith.constant 511 : i32
    %40 = tpu.dynamic_rotate %7 by %c511_i32 dim 1 : vector<8x512xf32>, i32 -> vector<8x512xf32>
    %cst_20 = arith.constant 0.000000e+00 : f32
    %41 = vector.broadcast %cst_20 : f32 to vector<8x512xf32>
    %42 = arith.select %16, %40, %41 : vector<8x512xi1>, vector<8x512xf32>
    %c40 = arith.constant 40 : index
    %c0_21 = arith.constant 0 : index
    %43 = vector.load %arg9[%c40, %c0_21] : memref<72x512xf32, #tpu.memory_space<vmem>>, vector<8x512xf32>
    tpu.vector_store %arg9[%c40, %c0_21], %42 {strides = array<i32>} : memref<72x512xf32, #tpu.memory_space<vmem>>, vector<8x512xf32>,
    %c497_i32 = arith.constant 497 : i32
    %44 = tpu.dynamic_rotate %7 by %c497_i32 dim 1 : vector<8x512xf32>, i32 -> vector<8x512xf32>
    %45 = arith.andi %14, %20 : vector<8x512xi1>
    %cst_22 = arith.constant 0.000000e+00 : f32
    %46 = vector.broadcast %cst_22 : f32 to vector<8x512xf32>
    %47 = arith.select %45, %44, %46 : vector<8x512xi1>, vector<8x512xf32>
    %c48 = arith.constant 48 : index
    %c0_23 = arith.constant 0 : index
    %48 = vector.load %arg9[%c48, %c0_23] : memref<72x512xf32, #tpu.memory_space<vmem>>, vector<8x512xf32>
    tpu.vector_store %arg9[%c48, %c0_23], %47 {strides = array<i32>} : memref<72x512xf32, #tpu.memory_space<vmem>>, vector<8x512xf32>,
    %c496_i32 = arith.constant 496 : i32
    %49 = tpu.dynamic_rotate %7 by %c496_i32 dim 1 : vector<8x512xf32>, i32 -> vector<8x512xf32>
    %cst_24 = arith.constant 0.000000e+00 : f32
    %50 = vector.broadcast %cst_24 : f32 to vector<8x512xf32>
    %51 = arith.select %20, %49, %50 : vector<8x512xi1>, vector<8x512xf32>
    %c56 = arith.constant 56 : index
    %c0_25 = arith.constant 0 : index
    %52 = vector.load %arg9[%c56, %c0_25] : memref<72x512xf32, #tpu.memory_space<vmem>>, vector<8x512xf32>
    tpu.vector_store %arg9[%c56, %c0_25], %51 {strides = array<i32>} : memref<72x512xf32, #tpu.memory_space<vmem>>, vector<8x512xf32>,
    %c495_i32 = arith.constant 495 : i32
    %53 = tpu.dynamic_rotate %7 by %c495_i32 dim 1 : vector<8x512xf32>, i32 -> vector<8x512xf32>
    %54 = arith.andi %16, %20 : vector<8x512xi1>
    %cst_26 = arith.constant 0.000000e+00 : f32
    %55 = vector.broadcast %cst_26 : f32 to vector<8x512xf32>
    %56 = arith.select %54, %53, %55 : vector<8x512xi1>, vector<8x512xf32>
    %c64 = arith.constant 64 : index
    %c0_27 = arith.constant 0 : index
    %57 = vector.load %arg9[%c64, %c0_27] : memref<72x512xf32, #tpu.memory_space<vmem>>, vector<8x512xf32>
    tpu.vector_store %arg9[%c64, %c0_27], %56 {strides = array<i32>} : memref<72x512xf32, #tpu.memory_space<vmem>>, vector<8x512xf32>,
    %c0_28 = arith.constant 0 : index
    %c0_29 = arith.constant 0 : index
    %58 = vector.load %arg4[%c0_28, %c0_29] : memref<8x72xbf16, #tpu.memory_space<vmem>>, vector<8x72xbf16>
    %c0_30 = arith.constant 0 : index
    %c0_31 = arith.constant 0 : index
    %59 = vector.load %arg9[%c0_30, %c0_31] : memref<72x512xf32, #tpu.memory_space<vmem>>, vector<72x512xf32>
    %60 = arith.truncf %59 : vector<72x512xf32> to vector<72x512xbf16>
    %cst_32 = arith.constant dense<0.000000e+00> : vector<8x512xf32>
    %61 = tpu.matmul %58, %60, %cst_32 {dimension_numbers = #tpu.dot_dimension_numbers<[1], [0], [0], [1], [0, 0, 1, 1], [], []>} : vector<8x72xbf16>, vector<72x512xbf16>, vector<8x512xf32> -> vector<8x512xf32>
    %c0_33 = arith.constant 0 : index
    %c0_34 = arith.constant 0 : index
    %62 = vector.load %arg5[%c0_33, %c0_34] : memref<8x1xf32, #tpu.memory_space<vmem>>, vector<8x1xf32>
    %63 = vector.broadcast %62 : vector<8x1xf32> to vector<8x512xf32>
    %64 = arith.addf %61, %63 : vector<8x512xf32>
    %cst_35 = arith.constant 0.000000e+00 : f32
    %65 = vector.broadcast %cst_35 : f32 to vector<8x512xf32>
    %66 = arith.maximumf %64, %65 : vector<8x512xf32>
    %c2_i32 = arith.constant 2 : i32
    %67 = vector.broadcast %c2_i32 : i32 to vector<8x512xi32>
    %68 = arith.cmpi sge, %12, %67 : vector<8x512xi32>
    %c14_i32 = arith.constant 14 : i32
    %69 = vector.broadcast %c14_i32 : i32 to vector<8x512xi32>
    %70 = arith.cmpi slt, %12, %69 : vector<8x512xi32>
    %c32_i32 = arith.constant 32 : i32
    %71 = vector.broadcast %c32_i32 : i32 to vector<8x512xi32>
    %72 = arith.cmpi sge, %10, %71 : vector<8x512xi32>
    %c224_i32 = arith.constant 224 : i32
    %73 = vector.broadcast %c224_i32 : i32 to vector<8x512xi32>
    %74 = arith.cmpi slt, %10, %73 : vector<8x512xi32>
    %c34_i32 = arith.constant 34 : i32
    %75 = tpu.dynamic_rotate %66 by %c34_i32 dim 1 : vector<8x512xf32>, i32 -> vector<8x512xf32>
    %76 = arith.andi %68, %72 : vector<8x512xi1>
    %cst_36 = arith.constant 0.000000e+00 : f32
    %77 = vector.broadcast %cst_36 : f32 to vector<8x512xf32>
    %78 = arith.select %76, %75, %77 : vector<8x512xi1>, vector<8x512xf32>
    %c0_37 = arith.constant 0 : index
    %c0_38 = arith.constant 0 : index
    %79 = vector.load %arg9[%c0_37, %c0_38] : memref<72x512xf32, #tpu.memory_space<vmem>>, vector<8x512xf32>
    tpu.vector_store %arg9[%c0_37, %c0_38], %78 {strides = array<i32>} : memref<72x512xf32, #tpu.memory_space<vmem>>, vector<8x512xf32>,
    %c32_i32_39 = arith.constant 32 : i32
    %80 = tpu.dynamic_rotate %66 by %c32_i32_39 dim 1 : vector<8x512xf32>, i32 -> vector<8x512xf32>
    %cst_40 = arith.constant 0.000000e+00 : f32
    %81 = vector.broadcast %cst_40 : f32 to vector<8x512xf32>
    %82 = arith.select %72, %80, %81 : vector<8x512xi1>, vector<8x512xf32>
    %c8_41 = arith.constant 8 : index
    %c0_42 = arith.constant 0 : index
    %83 = vector.load %arg9[%c8_41, %c0_42] : memref<72x512xf32, #tpu.memory_space<vmem>>, vector<8x512xf32>
    tpu.vector_store %arg9[%c8_41, %c0_42], %82 {strides = array<i32>} : memref<72x512xf32, #tpu.memory_space<vmem>>, vector<8x512xf32>,
    %c30_i32 = arith.constant 30 : i32
    %84 = tpu.dynamic_rotate %66 by %c30_i32 dim 1 : vector<8x512xf32>, i32 -> vector<8x512xf32>
    %85 = arith.andi %70, %72 : vector<8x512xi1>
    %cst_43 = arith.constant 0.000000e+00 : f32
    %86 = vector.broadcast %cst_43 : f32 to vector<8x512xf32>
    %87 = arith.select %85, %84, %86 : vector<8x512xi1>, vector<8x512xf32>
    %c16_44 = arith.constant 16 : index
    %c0_45 = arith.constant 0 : index
    %88 = vector.load %arg9[%c16_44, %c0_45] : memref<72x512xf32, #tpu.memory_space<vmem>>, vector<8x512xf32>
    tpu.vector_store %arg9[%c16_44, %c0_45], %87 {strides = array<i32>} : memref<72x512xf32, #tpu.memory_space<vmem>>, vector<8x512xf32>,
    %c2_i32_46 = arith.constant 2 : i32
    %89 = tpu.dynamic_rotate %66 by %c2_i32_46 dim 1 : vector<8x512xf32>, i32 -> vector<8x512xf32>
    %cst_47 = arith.constant 0.000000e+00 : f32
    %90 = vector.broadcast %cst_47 : f32 to vector<8x512xf32>
    %91 = arith.select %68, %89, %90 : vector<8x512xi1>, vector<8x512xf32>
    %c24_48 = arith.constant 24 : index
    %c0_49 = arith.constant 0 : index
    %92 = vector.load %arg9[%c24_48, %c0_49] : memref<72x512xf32, #tpu.memory_space<vmem>>, vector<8x512xf32>
    tpu.vector_store %arg9[%c24_48, %c0_49], %91 {strides = array<i32>} : memref<72x512xf32, #tpu.memory_space<vmem>>, vector<8x512xf32>,
    %c32_50 = arith.constant 32 : index
    %c0_51 = arith.constant 0 : index
    %93 = vector.load %arg9[%c32_50, %c0_51] : memref<72x512xf32, #tpu.memory_space<vmem>>, vector<8x512xf32>
    tpu.vector_store %arg9[%c32_50, %c0_51], %66 {strides = array<i32>} : memref<72x512xf32, #tpu.memory_space<vmem>>, vector<8x512xf32>,
    %c510_i32 = arith.constant 510 : i32
    %94 = tpu.dynamic_rotate %66 by %c510_i32 dim 1 : vector<8x512xf32>, i32 -> vector<8x512xf32>
    %cst_52 = arith.constant 0.000000e+00 : f32
    %95 = vector.broadcast %cst_52 : f32 to vector<8x512xf32>
    %96 = arith.select %70, %94, %95 : vector<8x512xi1>, vector<8x512xf32>
    %c40_53 = arith.constant 40 : index
    %c0_54 = arith.constant 0 : index
    %97 = vector.load %arg9[%c40_53, %c0_54] : memref<72x512xf32, #tpu.memory_space<vmem>>, vector<8x512xf32>
    tpu.vector_store %arg9[%c40_53, %c0_54], %96 {strides = array<i32>} : memref<72x512xf32, #tpu.memory_space<vmem>>, vector<8x512xf32>,
    %c482_i32 = arith.constant 482 : i32
    %98 = tpu.dynamic_rotate %66 by %c482_i32 dim 1 : vector<8x512xf32>, i32 -> vector<8x512xf32>
    %99 = arith.andi %68, %74 : vector<8x512xi1>
    %cst_55 = arith.constant 0.000000e+00 : f32
    %100 = vector.broadcast %cst_55 : f32 to vector<8x512xf32>
    %101 = arith.select %99, %98, %100 : vector<8x512xi1>, vector<8x512xf32>
    %c48_56 = arith.constant 48 : index
    %c0_57 = arith.constant 0 : index
    %102 = vector.load %arg9[%c48_56, %c0_57] : memref<72x512xf32, #tpu.memory_space<vmem>>, vector<8x512xf32>
    tpu.vector_store %arg9[%c48_56, %c0_57], %101 {strides = array<i32>} : memref<72x512xf32, #tpu.memory_space<vmem>>, vector<8x512xf32>,
    %c480_i32 = arith.constant 480 : i32
    %103 = tpu.dynamic_rotate %66 by %c480_i32 dim 1 : vector<8x512xf32>, i32 -> vector<8x512xf32>
    %cst_58 = arith.constant 0.000000e+00 : f32
    %104 = vector.broadcast %cst_58 : f32 to vector<8x512xf32>
    %105 = arith.select %74, %103, %104 : vector<8x512xi1>, vector<8x512xf32>
    %c56_59 = arith.constant 56 : index
    %c0_60 = arith.constant 0 : index
    %106 = vector.load %arg9[%c56_59, %c0_60] : memref<72x512xf32, #tpu.memory_space<vmem>>, vector<8x512xf32>
    tpu.vector_store %arg9[%c56_59, %c0_60], %105 {strides = array<i32>} : memref<72x512xf32, #tpu.memory_space<vmem>>, vector<8x512xf32>,
    %c478_i32 = arith.constant 478 : i32
    %107 = tpu.dynamic_rotate %66 by %c478_i32 dim 1 : vector<8x512xf32>, i32 -> vector<8x512xf32>
    %108 = arith.andi %70, %74 : vector<8x512xi1>
    %cst_61 = arith.constant 0.000000e+00 : f32
    %109 = vector.broadcast %cst_61 : f32 to vector<8x512xf32>
    %110 = arith.select %108, %107, %109 : vector<8x512xi1>, vector<8x512xf32>
    %c64_62 = arith.constant 64 : index
    %c0_63 = arith.constant 0 : index
    %111 = vector.load %arg9[%c64_62, %c0_63] : memref<72x512xf32, #tpu.memory_space<vmem>>, vector<8x512xf32>
    tpu.vector_store %arg9[%c64_62, %c0_63], %110 {strides = array<i32>} : memref<72x512xf32, #tpu.memory_space<vmem>>, vector<8x512xf32>,
    %c0_64 = arith.constant 0 : index
    %c0_65 = arith.constant 0 : index
    %112 = vector.load %arg6[%c0_64, %c0_65] : memref<8x72xbf16, #tpu.memory_space<vmem>>, vector<8x72xbf16>
    %c0_66 = arith.constant 0 : index
    %c0_67 = arith.constant 0 : index
    %113 = vector.load %arg9[%c0_66, %c0_67] : memref<72x512xf32, #tpu.memory_space<vmem>>, vector<72x512xf32>
    %114 = arith.truncf %113 : vector<72x512xf32> to vector<72x512xbf16>
    %cst_68 = arith.constant dense<0.000000e+00> : vector<8x512xf32>
    %115 = tpu.matmul %112, %114, %cst_68 {dimension_numbers = #tpu.dot_dimension_numbers<[1], [0], [0], [1], [0, 0, 1, 1], [], []>} : vector<8x72xbf16>, vector<72x512xbf16>, vector<8x512xf32> -> vector<8x512xf32>
    %c0_69 = arith.constant 0 : index
    %c0_70 = arith.constant 0 : index
    %116 = vector.load %arg7[%c0_69, %c0_70] : memref<8x1xf32, #tpu.memory_space<vmem>>, vector<8x1xf32>
    %117 = vector.broadcast %116 : vector<8x1xf32> to vector<8x512xf32>
    %118 = arith.addf %115, %117 : vector<8x512xf32>
    %cst_71 = arith.constant 0.000000e+00 : f32
    %119 = vector.broadcast %cst_71 : f32 to vector<8x512xf32>
    %120 = arith.maximumf %118, %119 : vector<8x512xf32>
    %121 = arith.addf %7, %120 : vector<8x512xf32>
    %c0_72 = arith.constant 0 : index
    %c0_73 = arith.constant 0 : index
    %122 = vector.load %arg8[%c0_72, %c0_73] : memref<8x512xf32, #tpu.memory_space<vmem>>, vector<8x512xf32>
    tpu.vector_store %arg8[%c0_72, %c0_73], %121 {strides = array<i32>} : memref<8x512xf32, #tpu.memory_space<vmem>>, vector<8x512xf32>,
    return
  }
  func.func @transform_0(%arg0: i32) -> (i32, i32) {
    %c0_i32 = arith.constant 0 : i32
    %c0_i32_0 = arith.constant 0 : i32
    return %c0_i32, %arg0 : i32, i32
  }
  func.func @transform_1(%arg0: i32) -> (i32, i32) {
    %c0_i32 = arith.constant 0 : i32
    %c0_i32_0 = arith.constant 0 : i32
    %c0_i32_1 = arith.constant 0 : i32
    return %c0_i32, %c0_i32_0 : i32, i32
  }
  func.func @transform_2(%arg0: i32) -> (i32, i32) {
    %c0_i32 = arith.constant 0 : i32
    %c0_i32_0 = arith.constant 0 : i32
    %c0_i32_1 = arith.constant 0 : i32
    return %c0_i32, %c0_i32_0 : i32, i32
  }
  func.func @transform_3(%arg0: i32) -> (i32, i32) {
    %c0_i32 = arith.constant 0 : i32
    %c0_i32_0 = arith.constant 0 : i32
    %c0_i32_1 = arith.constant 0 : i32
    return %c0_i32, %c0_i32_0 : i32, i32
  }
  func.func @transform_4(%arg0: i32) -> (i32, i32) {
    %c0_i32 = arith.constant 0 : i32
    %c0_i32_0 = arith.constant 0 : i32
    %c0_i32_1 = arith.constant 0 : i32
    return %c0_i32, %c0_i32_0 : i32, i32
  }
  func.func @transform_5(%arg0: i32) -> (i32, i32) {
    %c0_i32 = arith.constant 0 : i32
    %c0_i32_0 = arith.constant 0 : i32
    %c0_i32_1 = arith.constant 0 : i32
    return %c0_i32, %c0_i32_0 : i32, i32
  }
  func.func @transform_6(%arg0: i32) -> (i32, i32) {
    %c0_i32 = arith.constant 0 : i32
    %c0_i32_0 = arith.constant 0 : i32
    %c0_i32_1 = arith.constant 0 : i32
    return %c0_i32, %c0_i32_0 : i32, i32
  }
  func.func @transform_7(%arg0: i32) -> (i32, i32) {
    %c0_i32 = arith.constant 0 : i32
    %c0_i32_0 = arith.constant 0 : i32
    return %c0_i32, %arg0 : i32, i32
  }
}

</mosaic_0001>

<bundles_post_ra>
// kernel: tpu_custom_call.1
= control target key start
LH: loop header
LB: loop body
LE: loop exit
PB: predicated region body
PF: predicated region fallthrough
CT: control target
= control target key end

     0   :  { %12 = vsyncpa [#allocation4], 0  ;;  %s2506_s0 = inlined_call_operand.vmem [shape: f32[4,1024], index: 0, kind: input, shape index: {}]   ;;  %s2507_s1 = inlined_call_operand.vmem [shape: f32[8,4], index: 1, kind: input, shape index: {}]   ;;  %s2508_s2 = inlined_call_operand.vmem [shape: f32[8,1], index: 2, kind: input, shape index: {}]   ;;  %s2509_s3 = inlined_call_operand.vmem [shape: bf16[8,72], index: 3, kind: input, shape index: {}]   ;;  %s2510_s4 = inlined_call_operand.vmem [shape: f32[8,1], index: 4, kind: input, shape index: {}]   ;;  %s2511_s5 = inlined_call_operand.vmem [shape: bf16[8,72], index: 5, kind: input, shape index: {}]   ;;  %s2512_s6 = inlined_call_operand.vmem [shape: f32[8,1], index: 6, kind: input, shape index: {}]   ;;  %s2513_s7 = inlined_call_operand.hbm [shape: f32[8,1024], index: 7, kind: output, shape index: {}]  }
   0x1   :  { %14 = vsyncpa [#allocation4 + $0x1], 0  ;;  %s1754_s24 = smov 0   ;;  %s1756_s25 = smov 0  }
   0x2   :  { %s1758_s26 = smov 0   ;;  %s1760_s27 = smov 0  }
   0x3 LB: > { %s1775_s28 = sadd.s32 4294967295, %s1692_s27   ;;  %s1285_s29 = sadd.s32 4294967294, %s1692_s27   ;;  %s1692_s27 = sphi %s1760_s27, %s2611_s27   ;;  %s1688_s26 = sphi %s1758_s26, %s2610_s26   ;;  %s1684_s25 = sphi %s1756_s25, %s2609_s25   ;;  %s1680_s24 = sphi %s1754_s24, %s2608_s24  }
   0x4   : > { %s1779_s30 = sadd.s32 1, %s1692_s27   ;;  %s179_s8 = sadd.s32 1, %s1688_s26 }
   0x5   : > { %s176_s9 = ssub.s32 %s1692_s27, %s1779_s30  ;;  %p189_p0 = scmp.ne.s32.totalorder %s1688_s26, %s1684_s25 }
   0x6   : > { %p177_p1 = scmp.eq.s32.totalorder %s176_s9, 0  ;;  %p190_p2 = scmp.eq.s32.totalorder %s1775_s28, 1 }
   0x7   : > { %p195_p3 = scmp.ne.s32.totalorder %s1684_s25, %s1680_s24  ;;  %p196_p4 = scmp.eq.s32.totalorder %s1285_s29, 1 }
   0x8   : > { %s1790_s10 = scalar_select %p177_p1, %s1688_s26, %s179_s8  }
   0x9   : > { %p1792_p5 = por %p190_p2, %p189_p0  ;;  %p1796_p6 = por %p196_p4, %p195_p3 }
   0xa   : > { %p1288_p7 = scmp.ge.s32.totalorder %s1692_s27, 1  ;;  %p241_p8 = scmp.lt.s32.totalorder %s1692_s27, 3 }
   0xc   : > { %p242_p9 = pnand %p1288_p7, %p241_p8 }
   0xd   : > { %s1290_s13 = sshll.u32 (!%p242_p9), %s1775_s28, 2  ;;  %v1694_v0 = vmov (!%p242_p9), 0.0   ;;  %v284_v1 = vld [vmem:[%s2508_s2] sm:$0xff] (!%p242_p9)  ;;  %v1695_v2 = vmov (!%p242_p9), 0   ;;  %vm2514_vm0 = vcmask (!%p242_p9), 1043456   ;;  %vm294_vm1 = vcmask (!%p242_p9), 31744  }
   0xe   : > { %245 = sbr.rel (%p242_p9) target bundleno = 1009 (0x3f1), region = 48  ;;  %p274_p10 = scmp.lt.s32.totalorder (!%p242_p9), %s1290_s13, 7  ;;  %371 = vmatprep.mubr.f32.mxu0 (!%p242_p9), %v1694_v0  ;;  %442 = vmatprep.mubr.f32.mxu1 (!%p242_p9), %v1694_v0  ;;  %v283_v7 = vld [vmem:[%s2507_s1] sm:$0xff] (!%p242_p9)  ;;  %v453_v24 = vlaneseq (!%p242_p9)  ;;  %vm2515_vm9 = vmmov (!%p242_p9), 1  }
   0xf   : > { %1466 = vset.pattern.permute.xlu0 (!%p242_p9), %v1695_v2  ;;  %1547 = vset.pattern.permute.xlu1 (!%p242_p9), %v1695_v2  ;;  %s1696_s22 = smov (!%p242_p9), 17   ;;  %s1697_s23 = smov (!%p242_p9), 16   ;;  %v727_v23 = vld [vmem:[%s2510_s4] sm:$0xff] (!%p242_p9) }
  0x10   : > { %287 = vperm.xlu0 (!%p242_p9), %1466, %v284_v1   ;;  %s1698_s29 = smov (!%p242_p9), 15   ;;  %s1699_s8 = smov (!%p242_p9), 1   ;;  %v1835_v25 = vand.u32 (!%p242_p9), 127, %v453_v24 }
  0x11   : > { %s1700_s9 = smov (!%p242_p9), 127   ;;  %s1702_s14 = smov (!%p242_p9), 112  }
  0x12   : > { %s1703_s15 = smov (!%p242_p9), 111   ;;  %v1838_v26 = vadd.s32 (!%p242_p9), 128, %v1835_v25  ;;  %v1841_v27 = vadd.s32 (!%p242_p9), 256, %v1835_v25  ;;  %v1844_v28 = vadd.s32 (!%p242_p9), 384, %v1835_v25  ;;  %v458_v30 = vand.u32 (!%p242_p9), 255, %v1835_v25  ;;  %s1705_s20 = smov (!%p242_p9), 34  }
  0x13   : > { %v1851_v31 = vand.u32 (!%p242_p9), 15, %v1835_v25  ;;  %vm490_vm5 = vcmp.lt.s32.totalorder (!%p242_p9), %v1835_v25, 17  ;;  %vm515_vm8 = vcmp.lt.s32.totalorder (!%p242_p9), %v1835_v25, 16  ;;  %s1706_s21 = smov (!%p242_p9), 32   ;;  %s270_s18 = sand.u32 (!%p242_p9), 1, %s1684_s25  }
  0x14   : > { %v1847_v29 = vand.u32 (!%p242_p9), 15, %v1838_v26  ;;  %v460_v32 = vand.u32 (!%p242_p9), 255, %v1841_v27  ;;  %v1855_v33 = vand.u32 (!%p242_p9), 15, %v1841_v27  ;;  %v1858_v36 = vand.u32 (!%p242_p9), 15, %v1844_v28 }
  0x15   : > { %s2613_s13 = smov (!%p274_p10, %s1290_s13), 7  ;;  %vm466_vm3 = vcmp.ge.s32.totalorder %v1851_v31, 1  ;;  %vm1864_vm4 = vcmp.ge.s32.totalorder %v458_v30, 16 }
  0x16   : > { %s1291_s16 = sshll.u32 %s2613_s13, 2  ;;  %s1701_s13 = smov 113   ;;  %vm467_vm2 = vcmp.ge.s32.totalorder %v1847_v29, 1  ;;  %vm468_vm6 = vcmp.ge.s32.totalorder %v1855_v33, 1  ;;  %vm1872_vm7 = vcmp.ge.s32.totalorder %v460_v32, 16  ;;  %vm2517_vm11 = vcmp.ge.s32.totalorder %v1858_v36, 1  ;;  %vm1889_vm12 = vmand %vm466_vm3, %vm1864_vm4 }
  0x17   : > { %s277_s19 = scalar_lea.vmem %s2506_s0, %s1291_s16  ;;  %vm1880_vm10 = vmpackc.low %vm2515_vm9, %vm467_vm2 }
  0x18   : > { %v281_v3 = vld [vmem:[%s277_s19] sm:$0xff]  ;;  %v282_v4 = vld [vmem:[%s277_s19 + $0x8] sm:$0xff]  ;;  %vm1905_vm13 = vmand %vm468_vm6, %vm1872_vm7  ;;  %s1289_s19 = sshll.u32 %s270_s18, 5 }
  0x19   : > { %v292_v5 = vcombine.high %v281_v3, %v281_v3  ;;  %v293_v6 = vcombine.high %v282_v4, %v282_v4  ;;  %vm1920_vm14 = vmpackc.low %vm2515_vm9, %vm2517_vm11  ;;  %vm586_vm9 = vcmp.lt.s32.totalorder %v1835_v25, 127 }
  0x1a   : > { %vm1315_vm15 = vmpackc.low %vm1864_vm4, %vm1889_vm12  ;;  %vm536_vm12 = vcmp.lt.s32.totalorder %v1835_v25, 15 }
  0x1b   : > { %1292 = vmatprep.subr.msk.mxu0 %vm2514_vm0, %v292_v5  ;;  %1295 = vmatprep.subr.msk.mxu1 %vm2514_vm0, %v293_v6 }
  0x1c   : > { %1293 = vmatpush1.msk.msra.mxu0 %vm2514_vm0, %v281_v3  ;;  %1296 = vmatpush1.msk.msra.mxu1 %vm2514_vm0, %v282_v4  ;;  %vm561_vm0 = vcmp.lt.s32.totalorder %v1835_v25, 1 }
  0x1d   : > { %1294 = vmatmul.mubr.msk.f32.vlgmr.msra.gmra.mrb[0].mxu0 %vm294_vm1, %v283_v7  ;;  %1297 = vmatmul.mubr.msk.f32.vlgmr.msra.gmra.mrb[0].mxu1 %vm294_vm1, %v283_v7  ;;  %vm1339_vm1 = vmpackc.low %vm1872_vm7, %vm1905_vm13  ;;  %vm2518_vm13 = vcmp.lt.s32.totalorder %v1855_v33, 15 }
  0x1e   : > { %781 = vmatprep.mubr.bf16.mxu0 %v1695_v2  ;;  %822 = vmatprep.mubr.bf16.mxu1 %v1695_v2 }
  0x8f   : > { %v288_v8 = vpop.permute.xlu0 %287 }
  0xf0   : > { %v373_v9 = vpop.f32.mrb[0].mxu0  ;;  %v444_v10 = vpop.f32.mrb[0].mxu1 }
  0xf1   : > { %v374_v11 = vadd.f32 %v373_v9, %v288_v8  ;;  %v445_v12 = vadd.f32 %v444_v10, %v288_v8  ;;  %v375_v13 = vpop.f32.mrb[1].mxu0  ;;  %v446_v14 = vpop.f32.mrb[1].mxu1 }
  0xf2   : > { %v376_v15 = vadd.f32 %v375_v13, %v288_v8  ;;  %v447_v16 = vadd.f32 %v446_v14, %v288_v8 }
  0xf3   : > { %v1820_v17 = vmax.f32 %v374_v11, 0.0  ;;  %v1822_v18 = vmax.f32 %v445_v12, 0.0  ;;  %v459_v11 = vand.u32 255, %v1838_v26  ;;  %v461_v12 = vand.u32 255, %v1844_v28 }
  0xf4   : > { %v1824_v19 = vmax.f32 %v376_v15, 0.0  ;;  %v1826_v20 = vmax.f32 %v447_v16, 0.0 }
  0xf6   : > { %v1472_v21 = vpack.i.bf16 %v1826_v20, %v1822_v18  ;;  %v1467_v22 = vpack.i.bf16 %v1824_v19, %v1820_v17 }
  0xf8   : > { %1473 = vrot.lane.b32.xlu1 %v1472_v21, %s1696_s22  ;;  %1468 = vrot.lane.b32.xlu0 %v1467_v22, %s1696_s22  ;;  %s1707_s22 = smov 30  }
  0xfc   : > { %1478 = vrot.lane.b32.xlu1 %v1467_v22, %s1697_s23  ;;  %1483 = vrot.lane.b32.xlu0 %v1472_v21, %s1697_s23  ;;  %s1708_s23 = smov 2  }
 0x100   : > { %1488 = vrot.lane.b32.xlu1 %v1467_v22, %s1698_s29  ;;  %1493 = vrot.lane.b32.xlu0 %v1472_v21, %s1698_s29  ;;  %s1709_s29 = smov 126  }
 0x104   : > { %1498 = vrot.lane.b32.xlu1 %v1467_v22, %s1699_s8  ;;  %1503 = vrot.lane.b32.xlu0 %v1472_v21, %s1699_s8  ;;  %s1710_s8 = smov 98  }
 0x108   : > { %1508 = vrot.lane.b32.xlu1 %v1467_v22, %s1700_s9  ;;  %1513 = vrot.lane.b32.xlu0 %v1472_v21, %s1700_s9  ;;  %s1711_s9 = smov 96  }
 0x10c   : > { %1518 = vrot.lane.b32.xlu1 %v1467_v22, %s1701_s13  ;;  %1523 = vrot.lane.b32.xlu0 %v1472_v21, %s1701_s13  ;;  %s1712_s13 = smov 94  }
 0x110   : > { %1528 = vrot.lane.b32.xlu1 %v1467_v22, %s1702_s14  ;;  %1533 = vrot.lane.b32.xlu0 %v1472_v21, %s1702_s14 }
 0x114   : > { %1538 = vrot.lane.b32.xlu1 %v1467_v22, %s1703_s15  ;;  %1543 = vrot.lane.b32.xlu0 %v1472_v21, %s1703_s15 }
 0x118   : > { %730 = vperm.xlu1 %1547, %v727_v23  }
 0x16a   : > { %v1474_v34 = vpop.permute.xlu1 %1473  ;;  %v1469_v35 = vpop.permute.xlu0 %1468 }
 0x16b   : > { %v1476_v38 = vunpack.i.h.bf16 %v1474_v34  ;;  %v1475_v39 = vunpack.i.l.bf16 %v1474_v34  ;;  %v1471_v40 = vunpack.i.h.bf16 %v1469_v35  ;;  %v1470_v41 = vunpack.i.l.bf16 %v1469_v35 }
 0x16d   : > { %v491_v51 = vsel %vm490_vm5, %v1475_v39, %v1476_v38  ;;  %v492_v52 = vsel %vm490_vm5, %v1471_v40, %v1475_v39  ;;  %v493_v53 = vsel %vm490_vm5, %v1470_v41, %v1471_v40  ;;  %v494_v54 = vsel %vm490_vm5, %v1476_v38, %v1470_v41 }
 0x16e   : > { %v1479_v43 = vpop.permute.xlu1 %1478  ;;  %v1484_v44 = vpop.permute.xlu0 %1483  ;;  %vm471_vm5 = vcmp.lt.s32.totalorder %v1847_v29, 15 }
 0x16f   : > { %v1481_v46 = vunpack.i.h.bf16 %v1479_v43  ;;  %v1480_v47 = vunpack.i.l.bf16 %v1479_v43  ;;  %v1486_v48 = vunpack.i.h.bf16 %v1484_v44  ;;  %v1485_v49 = vunpack.i.l.bf16 %v1484_v44 }
 0x171   : > { %v518_v56 = vsel %vm515_vm8, %v1480_v47, %v1481_v46  ;;  %v519_v57 = vsel %vm515_vm8, %v1486_v48, %v1480_v47  ;;  %v516_v58 = vsel %vm515_vm8, %v1485_v49, %v1486_v48  ;;  %v517_v59 = vsel %vm515_vm8, %v1481_v46, %v1485_v49 }
 0x172   : > { %v1313_v61 = vpack.c.bf16 %v518_v56, %v493_v53  ;;  %v1316_v62 = vpack.c.bf16 %v519_v57, %v494_v54  ;;  %v1337_v63 = vpack.c.bf16 %v516_v58, %v491_v51  ;;  %v1340_v0 = vpack.c.bf16 %v517_v59, %v492_v52  ;;  %v1489_v1 = vpop.permute.xlu1 %1488  ;;  %v1494_v3 = vpop.permute.xlu0 %1493 }
 0x173   : > { %vm470_vm8 = vcmp.lt.s32.totalorder %v1851_v31, 15  ;;  %v1491_v4 = vunpack.i.h.bf16 %v1489_v1  ;;  %v1490_v5 = vunpack.i.l.bf16 %v1489_v1  ;;  %v1496_v6 = vunpack.i.h.bf16 %v1494_v3 }
 0x174   : > { %v1495_v7 = vunpack.i.l.bf16 %v1494_v3  ;;  %1314 = vmatprep.subr.msk.bf16.mxu0 %vm1880_vm10, %v1313_v61  ;;  %1338 = vmatprep.subr.msk.bf16.mxu1 %vm1920_vm14, %v1337_v63  ;;  %vm1946_vm10 = vmpackc.low %vm467_vm2, %vm471_vm5  ;;  %vm473_vm14 = vcmp.lt.s32.totalorder %v1858_v36, 15 }
 0x175   : > { %1317 = vmatpush1.bf16.msk.msra.mxu0 %vm1315_vm15, %v1316_v62  ;;  %1341 = vmatpush1.bf16.msk.msra.mxu1 %vm1339_vm1, %v1340_v0  ;;  %vm1957_vm15 = vmand %vm470_vm8, %vm1864_vm4  ;;  %v539_v22 = vsel %vm536_vm12, %v1490_v5, %v1491_v4  ;;  %v540_v23 = vsel %vm536_vm12, %v1496_v6, %v1490_v5  ;;  %v670_v0 = vld [vmem:[%s2509_s3] sm:$0xf] }
 0x176   : > { %v1499_v8 = vpop.permute.xlu1 %1498  ;;  %v1504_v9 = vpop.permute.xlu0 %1503  ;;  %v537_v24 = vsel %vm536_vm12, %v1495_v7, %v1496_v6  ;;  %v538_v34 = vsel %vm536_vm12, %v1491_v4, %v1495_v7  ;;  %vm1973_vm4 = vmand %vm2518_vm13, %vm1872_vm7  ;;  %vm2542_vm12 = vmmov 1  }
 0x177   : > { %v1501_v13 = vunpack.i.h.bf16 %v1499_v8  ;;  %v1500_v14 = vunpack.i.l.bf16 %v1499_v8  ;;  %v1506_v15 = vunpack.i.h.bf16 %v1504_v9  ;;  %v1505_v16 = vunpack.i.l.bf16 %v1504_v9  ;;  %vm1342_vm7 = vmpackc.low %vm2517_vm11, %vm473_vm14 }
 0x178   : > { %vm1321_vm1 = vmpackc.low %vm466_vm3, %vm1957_vm15  ;;  %vm2008_vm15 = vcmp.lt.s32.totalorder %v459_v11, 240 }
 0x179   : > { %v564_v37 = vsel %vm561_vm0, %v1500_v14, %v1501_v13  ;;  %v565_v38 = vsel %vm561_vm0, %v1506_v15, %v1500_v14  ;;  %v562_v39 = vsel %vm561_vm0, %v1505_v16, %v1506_v15  ;;  %v563_v40 = vsel %vm561_vm0, %v1501_v13, %v1505_v16  ;;  %vm1345_vm0 = vmpackc.low %vm468_vm6, %vm1973_vm4 }
 0x17a   : > { %v1319_v41 = vpack.c.bf16 %v564_v37, %v539_v22  ;;  %v1322_v42 = vpack.c.bf16 %v565_v38, %v540_v23  ;;  %v1343_v43 = vpack.c.bf16 %v562_v39, %v537_v24  ;;  %v1346_v44 = vpack.c.bf16 %v563_v40, %v538_v34  ;;  %v1509_v45 = vpop.permute.xlu1 %1508  ;;  %v1514_v46 = vpop.permute.xlu0 %1513  ;;  %vm2002_vm11 = vmpackc.low %vm471_vm5, %vm2542_vm12 }
 0x17b   : > { %v1511_v47 = vunpack.i.h.bf16 %v1509_v45  ;;  %v1510_v48 = vunpack.i.l.bf16 %v1509_v45  ;;  %v1516_v49 = vunpack.i.h.bf16 %v1514_v46  ;;  %v1515_v50 = vunpack.i.l.bf16 %v1514_v46  ;;  %vm1351_vm4 = vmpackc.low %vm2518_vm13, %vm2542_vm12 }
 0x17c   : > { %1320 = vmatprep.subr.msk.bf16.mxu0 %vm1946_vm10, %v1319_v41  ;;  %1344 = vmatprep.subr.msk.bf16.mxu1 %vm1342_vm7, %v1343_v43  ;;  %vm2023_vm10 = vmpackc.low %vm473_vm14, %vm2542_vm12  ;;  %vm2039_vm7 = vcmp.lt.s32.totalorder %v461_v12, 240 }
 0x17d   : > { %v589_v53 = vsel %vm586_vm9, %v1510_v48, %v1511_v47  ;;  %v590_v54 = vsel %vm586_vm9, %v1516_v49, %v1510_v48  ;;  %v587_v55 = vsel %vm586_vm9, %v1515_v50, %v1516_v49  ;;  %v588_v56 = vsel %vm586_vm9, %v1511_v47, %v1515_v50  ;;  %1323 = vmatpush1.bf16.msk.msra.mxu0 %vm1321_vm1, %v1322_v42  ;;  %vm1327_vm9 = vmpackc.low %vm470_vm8, %vm2542_vm12 }
 0x17e   : > { %v1328_v58 = vpack.c.bf16 %v589_v53, %v1820_v17  ;;  %v1349_v59 = vpack.c.bf16 %v590_v54, %v1826_v20  ;;  %v1325_v60 = vpack.c.bf16 %v588_v56, %v1824_v19  ;;  %v1352_v61 = vpack.c.bf16 %v587_v55, %v1822_v18  ;;  %1347 = vmatpush1.bf16.msk.msra.mxu1 %vm1345_vm0, %v1346_v44  ;;  %v1519_v62 = vpop.permute.xlu1 %1518  ;;  %v1524_v63 = vpop.permute.xlu0 %1523  ;;  %vm2051_vm1 = vmand %vm467_vm2, %vm2008_vm15 }
 0x17f   : > { %v1521_v1 = vunpack.i.h.bf16 %v1519_v62  ;;  %v1520_v3 = vunpack.i.l.bf16 %v1519_v62  ;;  %v1526_v4 = vunpack.i.h.bf16 %v1524_v63  ;;  %v1525_v5 = vunpack.i.l.bf16 %v1524_v63  ;;  %vm2060_vm13 = vmand %vm471_vm5, %vm2008_vm15 }
 0x180   : > { %1326 = vmatprep.subr.msk.bf16.mxu0 %vm2002_vm11, %v1325_v60  ;;  %1350 = vmatprep.subr.msk.bf16.mxu1 %vm2023_vm10, %v1349_v59  ;;  %vm607_vm0 = vcmp.lt.s32.totalorder %v1835_v25, 113  ;;  %vm632_vm11 = vcmp.lt.s32.totalorder %v1835_v25, 112  ;;  %vm653_vm2 = vcmp.lt.s32.totalorder %v1835_v25, 111  ;;  %vm2555_vm10 = vcmp.ge.s32.totalorder %v1858_v36, 1  ;;  %vm1330_vm5 = vmpackc.low %vm2008_vm15, %vm2051_vm1 }
 0x181   : > { %1329 = vmatpush1.bf16.msk.msra.mxu0 %vm1327_vm9, %v1328_v58  ;;  %vm2070_vm9 = vmand %vm2555_vm10, %vm2039_vm7  ;;  %v610_v21 = vsel %vm607_vm0, %v1520_v3, %v1521_v1  ;;  %v611_v22 = vsel %vm607_vm0, %v1526_v4, %v1520_v3  ;;  %v608_v23 = vsel %vm607_vm0, %v1525_v5, %v1526_v4  ;;  %v609_v24 = vsel %vm607_vm0, %v1521_v1, %v1525_v5 }
 0x182   : > { %1353 = vmatpush1.bf16.msk.msra.mxu1 %vm1351_vm4, %v1352_v61  ;;  %v1529_v8 = vpop.permute.xlu1 %1528  ;;  %v1534_v9 = vpop.permute.xlu0 %1533  ;;  %vm2090_vm4 = vmand %vm473_vm14, %vm2039_vm7  ;;  %vm836_vm1 = vcmp.ge.s32.totalorder %v1847_v29, 2  ;;  %vm2171_vm10 = vcmp.ge.s32.totalorder %v458_v30, 32 }
 0x183   : > { %v1531_v13 = vunpack.i.h.bf16 %v1529_v8  ;;  %v1530_v14 = vunpack.i.l.bf16 %v1529_v8  ;;  %v1536_v15 = vunpack.i.h.bf16 %v1534_v9  ;;  %v1535_v16 = vunpack.i.l.bf16 %v1534_v9  ;;  %vm1354_vm14 = vmpackc.low %vm2039_vm7, %vm2070_vm9 }
 0x184   : > { %vm1333_vm0 = vmpackc.low %vm2542_vm12, %vm466_vm3  ;;  %vm2560_vm3 = vcmp.lt.s32.totalorder %v1855_v33, 15  ;;  %vm859_vm9 = vcmp.lt.s32.totalorder %v1835_v25, 34 }
 0x185   : > { %v635_v35 = vsel %vm632_vm11, %v1530_v14, %v1531_v13  ;;  %v636_v37 = vsel %vm632_vm11, %v1536_v15, %v1530_v14  ;;  %v633_v38 = vsel %vm632_vm11, %v1535_v16, %v1536_v15  ;;  %v634_v39 = vsel %vm632_vm11, %v1531_v13, %v1535_v16  ;;  %vm1357_vm11 = vmpackc.low %vm2542_vm12, %vm468_vm6 }
 0x186   : > { %v1334_v40 = vpack.c.bf16 %v635_v35, %v610_v21  ;;  %v1331_v41 = vpack.c.bf16 %v634_v39, %v609_v24  ;;  %v1355_v42 = vpack.c.bf16 %v636_v37, %v611_v22  ;;  %v1358_v43 = vpack.c.bf16 %v633_v38, %v608_v23  ;;  %v1539_v44 = vpop.permute.xlu1 %1538  ;;  %v1544_v45 = vpop.permute.xlu0 %1543  ;;  %v1096_v35 = vld [vmem:[%s2512_s6] sm:$0xff] }
 0x187   : > { %v1541_v46 = vunpack.i.h.bf16 %v1539_v44  ;;  %v1540_v47 = vunpack.i.l.bf16 %v1539_v44  ;;  %v1546_v48 = vunpack.i.h.bf16 %v1544_v45  ;;  %v1545_v49 = vunpack.i.l.bf16 %v1544_v45 }
 0x188   : > { %1332 = vmatprep.subr.msk.bf16.mxu0 %vm1330_vm5, %v1331_v41  ;;  %1356 = vmatprep.subr.msk.bf16.mxu1 %vm1354_vm14, %v1355_v42  ;;  %vm2561_vm6 = vcmask 1043456   ;;  %vm2520_vm5 = vcmp.ge.s32.totalorder %v1855_v33, 2  ;;  %vm884_vm14 = vcmp.lt.s32.totalorder %v1835_v25, 32 }
 0x189   : > { %v656_v50 = vsel %vm653_vm2, %v1540_v47, %v1541_v46  ;;  %v657_v51 = vsel %vm653_vm2, %v1546_v48, %v1540_v47  ;;  %v654_v53 = vsel %vm653_vm2, %v1545_v49, %v1546_v48  ;;  %v655_v54 = vsel %vm653_vm2, %v1541_v46, %v1545_v49  ;;  %1335 = vmatpush1.bf16.msk.msra.mxu0 %vm1333_vm0, %v1334_v40  ;;  %vm2562_vm15 = vmmov %vm2561_vm6 }
 0x18a   : > { %1359 = vmatpush1.bf16.msk.msra.mxu1 %vm1357_vm11, %v1358_v43  ;;  %v663_v52 = vsel %vm2060_vm13, %v655_v54, 0.0  ;;  %v665_v55 = vsel %vm2090_vm4, %v657_v51, 0.0  ;;  %v662_v56 = vsel %vm470_vm8, %v656_v50, 0.0  ;;  %v664_v57 = vsel %vm2560_vm3, %v654_v53, 0.0  ;;  %vm2563_vm7 = vmmov %vm2561_vm6 }
 0x18b   : > { %v724_v58 = vpack.c.bf16 %v663_v52, %v663_v52  ;;  %v726_v59 = vpack.c.bf16 %v665_v55, %v665_v55  ;;  %v723_v60 = vpack.c.bf16 %v662_v56, %v662_v56  ;;  %v725_v61 = vpack.c.bf16 %v664_v57, %v664_v57  ;;  %vm2564_vm13 = vmmov %vm2561_vm6 }
 0x18c   : > { %vm2519_vm8 = vcmask 588800   ;;  %vm835_vm2 = vcmp.ge.s32.totalorder %v1851_v31, 2  ;;  %vm2179_vm4 = vcmp.ge.s32.totalorder %v460_v32, 32  ;;  %vm2187_vm0 = vmpackc.low %vm2542_vm12, %vm836_vm1  ;;  %vm2521_vm11 = vcmp.ge.s32.totalorder %v1858_v36, 2 }
 0x18d   : > { %1298 = vmatprep.subr.msk.bf16.mxu0 %vm2561_vm6, %v724_v58  ;;  %1300 = vmatprep.subr.msk.bf16.mxu1 %vm2562_vm15, %v726_v59  ;;  %v738_v62 = vsel %vm2563_vm7, %v723_v60, 0  ;;  %v744_v63 = vsel %vm2564_vm13, %v725_v61, 0  ;;  %vm2196_vm3 = vmand %vm835_vm2, %vm2171_vm10 }
 0x18e   : > { %758 = vmatpush1.bf16.msra.mxu0 %v738_v62  ;;  %799 = vmatpush1.bf16.msra.mxu1 %v744_v63  ;;  %vm2212_vm6 = vmand %vm2520_vm5, %vm2179_vm4  ;;  %vm955_vm5 = vcmp.lt.s32.totalorder %v1835_v25, 126 }
 0x18f   : > { %vm2227_vm15 = vmpackc.low %vm2542_vm12, %vm2521_vm11 }
 0x190   : > { %vm1363_vm7 = vmpackc.low %vm2171_vm10, %vm2196_vm3  ;;  %vm905_vm3 = vcmp.lt.s32.totalorder %v1835_v25, 30 }
 0x191   : > { %1299 = vmatmul.mubr.msk.bf16.vlgmr.msra.gmra.mrb[4].mxu0 %vm2519_vm8, %v670_v0  ;;  %1301 = vmatmul.mubr.msk.bf16.vlgmr.msra.gmra.mrb[4].mxu1 %vm2519_vm8, %v670_v0  ;;  %vm1387_vm13 = vmpackc.low %vm2179_vm4, %vm2212_vm6  ;;  %vm841_vm8 = vcmp.lt.s32.totalorder %v1855_v33, 14  ;;  %vm930_vm6 = vcmp.lt.s32.totalorder %v1835_v25, 2 }
 0x192   : > { %1149 = vmatprep.mubr.bf16.mxu0 %v1695_v2  ;;  %1190 = vmatprep.mubr.bf16.mxu1 %v1695_v2 }
 0x197   : > { %v731_v1 = vpop.permute.xlu1 %730 }
 0x264   : > { %v783_v3 = vpop.f32.mrb[4].mxu0  ;;  %v824_v4 = vpop.f32.mrb[4].mxu1 }
 0x265   : > { %v2144_v5 = vadd.f32 %v783_v3, %v731_v1  ;;  %v2146_v6 = vadd.f32 %v824_v4, %v731_v1  ;;  %v785_v7 = vpop.f32.mrb[5].mxu0  ;;  %v826_v8 = vpop.f32.mrb[5].mxu1 }
 0x266   : > { %v2148_v9 = vadd.f32 %v785_v7, %v731_v1  ;;  %v2150_v10 = vadd.f32 %v826_v8, %v731_v1  ;;  %v787_v13 = vpop.f32.mrb[6].mxu0  ;;  %v828_v14 = vpop.f32.mrb[6].mxu1 }
 0x267   : > { %v831_v15 = vmax.f32 %v2144_v5, 0.0  ;;  %v833_v16 = vmax.f32 %v2146_v6, 0.0  ;;  %v788_v2 = vpop.f32.mrb[7].mxu0  ;;  %v829_v21 = vpop.f32.mrb[7].mxu1 }
 0x268   : > { %v832_v22 = vmax.f32 %v2148_v9, 0.0  ;;  %v834_v23 = vmax.f32 %v2150_v10, 0.0 }
 0x26a   : > { %v1553_v24 = vpack.i.bf16 %v834_v23, %v833_v16  ;;  %v1548_v34 = vpack.i.bf16 %v832_v22, %v831_v15 }
 0x26c   : > { %1554 = vrot.lane.b32.xlu1 %v1553_v24, %s1705_s20  ;;  %1549 = vrot.lane.b32.xlu0 %v1548_v34, %s1705_s20  ;;  %s1311_s20 = sshll.u32 %s1775_s28, 9  ;;  %s1212_s28 = scalar_lea.sflag [#allocation4], %s270_s18 }
 0x270   : > { %1564 = vrot.lane.b32.xlu1 %v1553_v24, %s1706_s21  ;;  %1559 = vrot.lane.b32.xlu0 %v1548_v34, %s1706_s21  ;;  %s272_s21 = scalar_lea.vmem [#allocation3], %s1289_s19 }
 0x274   : > { %1574 = vrot.lane.b32.xlu1 %v1553_v24, %s1707_s22  ;;  %1569 = vrot.lane.b32.xlu0 %v1548_v34, %s1707_s22  ;;  %s1226_s22 = sshll.u32 %s272_s21, 4  ;;  %s2464_s22 = int_to_ptr.vmem [resolvable:$true] %s1226_s22 }
 0x278   : > { %1584 = vrot.lane.b32.xlu1 %v1553_v24, %s1708_s23  ;;  %1579 = vrot.lane.b32.xlu0 %v1548_v34, %s1708_s23 }
 0x27c   : > { %1594 = vrot.lane.b32.xlu1 %v1553_v24, %s1709_s29  ;;  %1589 = vrot.lane.b32.xlu0 %v1548_v34, %s1709_s29 }
 0x280   : > { %1604 = vrot.lane.b32.xlu1 %v1553_v24, %s1710_s8  ;;  %1599 = vrot.lane.b32.xlu0 %v1548_v34, %s1710_s8  ;;  %s2462_s8 = scalar_lea.hbm %s2513_s7, %s1311_s20 }
 0x284   : > { %1614 = vrot.lane.b32.xlu1 %v1553_v24, %s1711_s9  ;;  %1609 = vrot.lane.b32.xlu0 %v1548_v34, %s1711_s9  ;;  %s1630_s9 = scalar_lea.vmem %s2464_s22, 512 }
 0x285   : > { %p1631_p11 = scmp.ne.s32.totalorder %s2464_s22, %s1630_s9 }
 0x287   : > { %p1632_p12 = pnand %p1631_p11, %p1792_p5 }
 0x288   : > { %1624 = vrot.lane.b32.xlu1 %v1553_v24, %s1712_s13  ;;  %1619 = vrot.lane.b32.xlu0 %v1548_v34, %s1712_s13  ;;  %s1713_s13 = smov [#allocation3]  }
 0x289   : > { %p1633_p13 = pneg %p1632_p12  ;;  %s1634_s14 = sshll.u32 %s1713_s13, 4  ;;  %s1635_s14 = int_to_ptr.vmem [resolvable:$false] %s1634_s14 }
 0x28a   : > { %s1636_s15 = scalar_lea.vmem %s1635_s14, 1024  ;;  %p1637_p0 = scmp.lt.s32.totalorder %s2464_s22, %s1635_s14 }
 0x28b   : > { %p1638_p1 = scmp.lt.s32.totalorder %s1636_s15, %s1630_s9 }
 0x28c   : > { %1099 = vperm.xlu0 %1466, %v1096_v35  }
 0x28d   : > { %p1639_p2 = por %p1638_p1, %p1637_p0 }
 0x28f   : > { %p1640_p3 = pnand %p1639_p2, %p1633_p13 }
 0x2de   : > { %v1555_v37 = vpop.permute.xlu1 %1554  ;;  %v1550_v38 = vpop.permute.xlu0 %1549 }
 0x2df   : > { %v1557_v40 = vunpack.i.h.bf16 %v1555_v37  ;;  %v1556_v41 = vunpack.i.l.bf16 %v1555_v37  ;;  %v1552_v42 = vunpack.i.h.bf16 %v1550_v38  ;;  %v1551_v43 = vunpack.i.l.bf16 %v1550_v38 }
 0x2e1   : > { %v860_v50 = vsel %vm859_vm9, %v1556_v41, %v1557_v40  ;;  %v861_v51 = vsel %vm859_vm9, %v1552_v42, %v1556_v41  ;;  %v862_v53 = vsel %vm859_vm9, %v1551_v43, %v1552_v42  ;;  %v863_v54 = vsel %vm859_vm9, %v1557_v40, %v1551_v43 }
 0x2e2   : > { %v1565_v30 = vpop.permute.xlu1 %1564  ;;  %v1560_v45 = vpop.permute.xlu0 %1559  ;;  %vm840_vm9 = vcmp.lt.s32.totalorder %v1847_v29, 14 }
 0x2e3   : > { %v1567_v47 = vunpack.i.h.bf16 %v1565_v30  ;;  %v1566_v48 = vunpack.i.l.bf16 %v1565_v30  ;;  %v1562_v27 = vunpack.i.h.bf16 %v1560_v45  ;;  %v1561_v32 = vunpack.i.l.bf16 %v1560_v45 }
 0x2e5   : > { %v885_v55 = vsel %vm884_vm14, %v1566_v48, %v1567_v47  ;;  %v886_v56 = vsel %vm884_vm14, %v1562_v27, %v1566_v48  ;;  %v887_v57 = vsel %vm884_vm14, %v1561_v32, %v1562_v27  ;;  %v888_v58 = vsel %vm884_vm14, %v1567_v47, %v1561_v32 }
 0x2e6   : > { %v1385_v60 = vpack.c.bf16 %v885_v55, %v860_v50  ;;  %v1361_v61 = vpack.c.bf16 %v887_v57, %v862_v53  ;;  %v1364_v62 = vpack.c.bf16 %v888_v58, %v863_v54  ;;  %v1388_v63 = vpack.c.bf16 %v886_v56, %v861_v51  ;;  %v1575_v0 = vpop.permute.xlu1 %1574  ;;  %v1570_v1 = vpop.permute.xlu0 %1569 }
 0x2e7   : > { %vm839_vm14 = vcmp.lt.s32.totalorder %v1851_v31, 14  ;;  %v1577_v3 = vunpack.i.h.bf16 %v1575_v0  ;;  %v1576_v4 = vunpack.i.l.bf16 %v1575_v0  ;;  %v1572_v7 = vunpack.i.h.bf16 %v1570_v1  ;;  %v1039_v31 = vld [vmem:[%s2511_s5] sm:$0xf] }
 0x2e8   : > { %v1571_v8 = vunpack.i.l.bf16 %v1570_v1  ;;  %1362 = vmatprep.subr.msk.bf16.mxu0 %vm2187_vm0, %v1361_v61  ;;  %1386 = vmatprep.subr.msk.bf16.mxu1 %vm2227_vm15, %v1385_v60  ;;  %vm2253_vm0 = vmpackc.low %vm836_vm1, %vm840_vm9  ;;  %vm842_vm15 = vcmp.lt.s32.totalorder %v1858_v36, 14 }
 0x2e9   : > { %1365 = vmatpush1.bf16.msk.msra.mxu0 %vm1363_vm7, %v1364_v62  ;;  %1389 = vmatpush1.bf16.msk.msra.mxu1 %vm1387_vm13, %v1388_v63  ;;  %vm2262_vm7 = vmand %vm839_vm14, %vm2171_vm10  ;;  %v906_v38 = vsel %vm905_vm3, %v1576_v4, %v1577_v3  ;;  %v907_v40 = vsel %vm905_vm3, %v1572_v7, %v1576_v4 }
 0x2ea   : > { %v1585_v13 = vpop.permute.xlu1 %1584  ;;  %v1580_v14 = vpop.permute.xlu0 %1579  ;;  %v908_v41 = vsel %vm905_vm3, %v1571_v8, %v1572_v7  ;;  %v909_v42 = vsel %vm905_vm3, %v1577_v3, %v1571_v8  ;;  %vm2278_vm10 = vmand %vm841_vm8, %vm2179_vm4  ;;  %vm2583_vm3 = vcmp.ge.s32.totalorder %v1855_v33, 2 }
 0x2eb   : > { %v1587_v21 = vunpack.i.h.bf16 %v1585_v13  ;;  %v1586_v24 = vunpack.i.l.bf16 %v1585_v13  ;;  %v1582_v34 = vunpack.i.h.bf16 %v1580_v14  ;;  %v1581_v35 = vunpack.i.l.bf16 %v1580_v14  ;;  %vm1390_vm4 = vmpackc.low %vm2521_vm11, %vm842_vm15 }
 0x2ec   : > { %vm1369_vm13 = vmpackc.low %vm835_vm2, %vm2262_vm7  ;;  %vm2313_vm7 = vcmp.lt.s32.totalorder %v459_v11, 224 }
 0x2ed   : > { %v931_v43 = vsel %vm930_vm6, %v1586_v24, %v1587_v21  ;;  %v932_v30 = vsel %vm930_vm6, %v1582_v34, %v1586_v24  ;;  %v933_v45 = vsel %vm930_vm6, %v1581_v35, %v1582_v34  ;;  %v934_v46 = vsel %vm930_vm6, %v1587_v21, %v1581_v35  ;;  %vm1393_vm6 = vmpackc.low %vm2583_vm3, %vm2278_vm10 }
 0x2ee   : > { %v1391_v44 = vpack.c.bf16 %v931_v43, %v906_v38  ;;  %v1367_v47 = vpack.c.bf16 %v933_v45, %v908_v41  ;;  %v1370_v48 = vpack.c.bf16 %v934_v46, %v909_v42  ;;  %v1394_v27 = vpack.c.bf16 %v932_v30, %v907_v40  ;;  %v1595_v32 = vpop.permute.xlu1 %1594  ;;  %v1590_v49 = vpop.permute.xlu0 %1589  ;;  %vm2307_vm11 = vmpackc.low %vm840_vm9, %vm2542_vm12 }
 0x2ef   : > { %v1597_v50 = vunpack.i.h.bf16 %v1595_v32  ;;  %v1596_v51 = vunpack.i.l.bf16 %v1595_v32  ;;  %v1592_v53 = vunpack.i.h.bf16 %v1590_v49  ;;  %v1591_v54 = vunpack.i.l.bf16 %v1590_v49  ;;  %vm1399_vm10 = vmpackc.low %vm841_vm8, %vm2542_vm12 }
 0x2f0   : > { %1368 = vmatprep.subr.msk.bf16.mxu0 %vm2253_vm0, %v1367_v47  ;;  %1392 = vmatprep.subr.msk.bf16.mxu1 %vm1390_vm4, %v1391_v44  ;;  %vm2328_vm0 = vmpackc.low %vm842_vm15, %vm2542_vm12  ;;  %vm2348_vm4 = vcmp.lt.s32.totalorder %v461_v12, 224  ;;  %vm976_vm3 = vcmp.lt.s32.totalorder %v1835_v25, 98 }
 0x2f1   : > { %v956_v56 = vsel %vm955_vm5, %v1596_v51, %v1597_v50  ;;  %v957_v57 = vsel %vm955_vm5, %v1592_v53, %v1596_v51  ;;  %v958_v58 = vsel %vm955_vm5, %v1591_v54, %v1592_v53  ;;  %v959_v59 = vsel %vm955_vm5, %v1597_v50, %v1591_v54  ;;  %1371 = vmatpush1.bf16.msk.msra.mxu0 %vm1369_vm13, %v1370_v48  ;;  %vm1375_vm5 = vmpackc.low %vm839_vm14, %vm2542_vm12 }
 0x2f2   : > { %v1400_v11 = vpack.c.bf16 %v956_v56, %v833_v16  ;;  %v1373_v60 = vpack.c.bf16 %v957_v57, %v832_v22  ;;  %v1376_v61 = vpack.c.bf16 %v958_v58, %v831_v15  ;;  %v1397_v62 = vpack.c.bf16 %v959_v59, %v834_v23  ;;  %1395 = vmatpush1.bf16.msk.msra.mxu1 %vm1393_vm6, %v1394_v27  ;;  %v1605_v63 = vpop.permute.xlu1 %1604  ;;  %v1600_v0 = vpop.permute.xlu0 %1599  ;;  %vm2359_vm13 = vmpackc.low %vm2542_vm12, %vm835_vm2 }
 0x2f3   : > { %v1607_v5 = vunpack.i.h.bf16 %v1605_v63  ;;  %v1606_v9 = vunpack.i.l.bf16 %v1605_v63  ;;  %v1602_v10 = vunpack.i.h.bf16 %v1600_v0  ;;  %v1601_v15 = vunpack.i.l.bf16 %v1600_v0  ;;  %vm2368_vm6 = vmand %vm836_vm1, %vm2313_vm7 }
 0x2f4   : > { %1374 = vmatprep.subr.msk.bf16.mxu0 %vm2307_vm11, %v1373_v60  ;;  %1398 = vmatprep.subr.msk.bf16.mxu1 %vm2328_vm0, %v1397_v62  ;;  %vm1001_vm11 = vcmp.lt.s32.totalorder %v1835_v25, 96  ;;  %vm1022_vm2 = vcmp.lt.s32.totalorder %v1835_v25, 94  ;;  %vm2596_vm0 = vcmp.ge.s32.totalorder %v1858_v36, 2  ;;  %vm2386_vm1 = vmand %vm840_vm9, %vm2313_vm7 }
 0x2f5   : > { %1377 = vmatpush1.bf16.msk.msra.mxu0 %vm1375_vm5, %v1376_v61  ;;  %vm2378_vm5 = vmand %vm2596_vm0, %vm2348_vm4  ;;  %v977_v13 = vsel %vm976_vm3, %v1606_v9, %v1607_v5  ;;  %v978_v14 = vsel %vm976_vm3, %v1602_v10, %v1606_v9  ;;  %v979_v2 = vsel %vm976_vm3, %v1601_v15, %v1602_v10  ;;  %v980_v21 = vsel %vm976_vm3, %v1607_v5, %v1601_v15 }
 0x2f6   : > { %1401 = vmatpush1.bf16.msk.msra.mxu1 %vm1399_vm10, %v1400_v11  ;;  %v1615_v12 = vpop.permute.xlu1 %1614  ;;  %v1610_v22 = vpop.permute.xlu0 %1609  ;;  %vm1378_vm9 = vmpackc.low %vm2313_vm7, %vm2368_vm6 }
 0x2f7   : > { %v1617_v1 = vunpack.i.h.bf16 %v1615_v12  ;;  %v1616_v3 = vunpack.i.l.bf16 %v1615_v12  ;;  %v1612_v4 = vunpack.i.h.bf16 %v1610_v22  ;;  %v1611_v7 = vunpack.i.l.bf16 %v1610_v22  ;;  %vm1402_vm10 = vmpackc.low %vm2348_vm4, %vm2378_vm5 }
 0x2f8   : > { %vm1030_vm3 = vmand %vm842_vm15, %vm2348_vm4 }
 0x2f9   : > { %v1002_v29 = vsel %vm1001_vm11, %v1616_v3, %v1617_v1  ;;  %v1003_v24 = vsel %vm1001_vm11, %v1612_v4, %v1616_v3  ;;  %v1004_v34 = vsel %vm1001_vm11, %v1611_v7, %v1612_v4  ;;  %v1005_v35 = vsel %vm1001_vm11, %v1617_v1, %v1611_v7 }
 0x2fa   : > { %v1406_v37 = vpack.c.bf16 %v1002_v29, %v977_v13  ;;  %v1379_v38 = vpack.c.bf16 %v1003_v24, %v978_v14  ;;  %v1382_v40 = vpack.c.bf16 %v1004_v34, %v979_v2  ;;  %v1403_v41 = vpack.c.bf16 %v1005_v35, %v980_v21  ;;  %v1625_v42 = vpop.permute.xlu1 %1624  ;;  %v1620_v39 = vpop.permute.xlu0 %1619 }
 0x2fb   : > { %v1627_v43 = vunpack.i.h.bf16 %v1625_v42  ;;  %v1626_v30 = vunpack.i.l.bf16 %v1625_v42  ;;  %v1622_v45 = vunpack.i.h.bf16 %v1620_v39  ;;  %v1621_v46 = vunpack.i.l.bf16 %v1620_v39 }
 0x2fc   : > { %vm2601_vm11 = vcmp.ge.s32.totalorder %v1855_v33, 2  ;;  %1380 = vmatprep.subr.msk.bf16.mxu0 %vm1378_vm9, %v1379_v38  ;;  %1404 = vmatprep.subr.msk.bf16.mxu1 %vm1402_vm10, %v1403_v41 }
 0x2fd   : > { %vm1405_vm0 = vmpackc.low %vm2542_vm12, %vm2601_vm11  ;;  %v1023_v44 = vsel %vm1022_vm2, %v1626_v30, %v1627_v43  ;;  %v1024_v36 = vsel %vm1022_vm2, %v1622_v45, %v1626_v30  ;;  %v1025_v47 = vsel %vm1022_vm2, %v1621_v46, %v1622_v45  ;;  %v1026_v48 = vsel %vm1022_vm2, %v1627_v43, %v1621_v46  ;;  %1383 = vmatpush1.bf16.msk.msra.mxu0 %vm2359_vm13, %v1382_v40 }
 0x2fe   : > { %1407 = vmatpush1.bf16.msk.msra.mxu1 %vm1405_vm0, %v1406_v37  ;;  %v1032_v27 = vsel %vm2386_vm1, %v1024_v36, 0.0  ;;  %v1034_v32 = vsel %vm1030_vm3, %v1026_v48, 0.0  ;;  %v1031_v49 = vsel %vm839_vm14, %v1025_v47, 0.0  ;;  %v1033_v50 = vsel %vm841_vm8, %v1023_v44, 0.0 }
 0x2ff   : > { %v1093_v51 = vpack.c.bf16 %v1032_v27, %v1032_v27  ;;  %v1095_v53 = vpack.c.bf16 %v1034_v32, %v1034_v32  ;;  %v1092_v25 = vpack.c.bf16 %v1031_v49, %v1031_v49  ;;  %v1094_v54 = vpack.c.bf16 %v1033_v50, %v1033_v50 }
 0x300   : > { %vm2602_vm12 = vcmask 1043456   ;;  %vm2606_vm14 = vcmask 588800  }
 0x301   : > { %1302 = vmatprep.subr.msk.bf16.mxu0 %vm2602_vm12, %v1093_v51  ;;  %vm2603_vm15 = vmmov %vm2602_vm12 }
 0x302   : > { %1304 = vmatprep.subr.msk.bf16.mxu1 %vm2603_vm15, %v1095_v53  ;;  %vm2604_vm7 = vmmov %vm2602_vm12 }
 0x303   : > { %v1106_v52 = vsel %vm2604_vm7, %v1092_v25, 0  ;;  %vm2605_vm4 = vmmov %vm2604_vm7 }
 0x304   : > { %v1112_v55 = vsel %vm2605_vm4, %v1094_v54, 0  ;;  %1126 = vmatpush1.bf16.msra.mxu0 %v1106_v52  ;;  %vm2607_vm8 = vmmov %vm2606_vm14 }
 0x305   : > { %1167 = vmatpush1.bf16.msra.mxu1 %v1112_v55 }
 0x307   : > { %1303 = vmatmul.mubr.msk.bf16.vlgmr.msra.gmra.mrb[8].mxu0 %vm2606_vm14, %v1039_v31 }
 0x308   : > { %1305 = vmatmul.mubr.msk.bf16.vlgmr.msra.gmra.mrb[8].mxu1 %vm2607_vm8, %v1039_v31 }
 0x30b   : > { %v1100_v33 = vpop.permute.xlu0 %1099 }
 0x3da   : > { %v1151_v56 = vpop.f32.mrb[8].mxu0 }
 0x3db   : > { %v1192_v57 = vpop.f32.mrb[8].mxu1  ;;  %v1152_v58 = vadd.f32 %v1151_v56, %v1100_v33  ;;  %v1153_v26 = vpop.f32.mrb[9].mxu0 }
 0x3dc   : > { %v1193_v59 = vadd.f32 %v1192_v57, %v1100_v33  ;;  %v1194_v11 = vpop.f32.mrb[9].mxu1  ;;  %v1154_v60 = vadd.f32 %v1153_v26, %v1100_v33  ;;  %v1155_v62 = vpop.f32.mrb[10].mxu0 }
 0x3dd   : > { %v1195_v61 = vadd.f32 %v1194_v11, %v1100_v33  ;;  %v1196_v63 = vpop.f32.mrb[10].mxu1  ;;  %v1199_v0 = vmax.f32 %v1152_v58, 0.0  ;;  %v1156_v5 = vpop.f32.mrb[11].mxu0 }
 0x3de   : > { %v1201_v6 = vmax.f32 %v1193_v59, 0.0  ;;  %v1197_v9 = vpop.f32.mrb[11].mxu1  ;;  %v1200_v10 = vmax.f32 %v1154_v60, 0.0 }
 0x3df   : > { %v1202_v15 = vmax.f32 %v1195_v61, 0.0  ;;  %v1203_v16 = vadd.f32 %v1199_v0, %v1820_v17 }
 0x3e0   : > { %v1205_v28 = vadd.f32 %v1201_v6, %v1822_v18  ;;  %v1204_v12 = vadd.f32 %v1200_v10, %v1824_v19 }
 0x3e1   : > { %v1206_v22 = vadd.f32 %v1202_v15, %v1826_v20  ;;  %1207 = vst [vmem:[%s272_s21] sm:$0xff] %v1203_v16 }
 0x3e2   : > { %1209 = vst [vmem:[%s272_s21 + $0x10] sm:$0xff] %v1205_v28  ;;  %1208 = vst [vmem:[%s272_s21 + $0x8] sm:$0xff] %v1204_v12 }
 0x3e3   : > { %1210 = vst [vmem:[%s272_s21 + $0x18] sm:$0xff] %v1206_v22 }
 0x3e4   : > { %1643 = shalt.err (!%p1640_p3)
}
 0x3e5   : > { %s1644_s16 = scalar_lea.hbm %s2462_s8, 512  ;;  %s1648_s19 = scalar_lea.hbm %s2513_s7, 1024 }
 0x3e6   : > { %p1645_p4 = scmp.ne.s32.totalorder %s2462_s8, %s1644_s16  ;;  %p1649_p9 = scmp.lt.u32.totalorder %s2462_s8, %s2513_s7 }
 0x3e7   : > { %p1650_p10 = scmp.lt.u32.totalorder %s1648_s19, %s1644_s16  ;;  %p1652_p12 = scmp.lt.u32.totalorder %s1644_s16, %s2462_s8 }
 0x3e8   : > { %p1646_p7 = pnand %p1645_p4, %p1792_p5 }
 0x3e9   : > { %p1651_p11 = por %p1650_p10, %p1649_p9 }
 0x3ea   : > { %p1647_p8 = pneg %p1646_p7 }
 0x3eb   : > { %p1653_p13 = por %p1652_p12, %p1651_p11 }
 0x3ed   : > { %p1654_p0 = pnand %p1653_p13, %p1647_p8 }
 0x3ef   : > { %1657 = shalt.err (!%p1654_p0)
}
 0x3f0   : > { %1408 = dma.vmem_to_hbm [thread:$0]  (%p1792_p5), %s2464_s22, 512, %s2462_s8, %s1212_s28  }
 0x3f1 PF: > { %p1414_p1 = scmp.ge.s32.totalorder %s1692_s27, 2  ;;  %s1238_s23 = sand.u32 1, %s1680_s24  }
 0x3f2   : > { %s1239_s29 = scalar_lea.sflag [#allocation4], %s1238_s23 }
 0x3f3   : > { %p1411_p2 = pnand %p1414_p1, %p1796_p6 }
 0x3f5   : > { %1675 = dma.done.wait (!%p1411_p2), %s1239_s29, 512  }
 0x3f6   : > { %1677 = vsyncadd (!%p1411_p2), %s1239_s29, 4294966784  ;;  %p17_p3 = scmp.ge.s32.totalorder %s1779_s30, 4   ;;  %s2608_s24 = smov %s1684_s25 }
 0x3f7   : > { %s2609_s25 = smov %s1688_s26  ;;  %s2610_s26 = smov %s1790_s10 }
 0x3f8   : > { %s2611_s27 = smov %s1779_s30  ;;  %19 = sbr.rel (!%p17_p3) target bundleno = 3 (0x3), region = 83 }
 0x3ff   :  { %1244 = vsyncpa [#allocation4], 1 }
 0x400   :  { %1246 = vsyncpa [#allocation4 + $0x1], 1 }

</bundles_post_ra>
